<compile_context>
chip_gen: v5e
topology: v5e:2x2
jax: 0.10.0
libtpu: 0.0.40
codegen_flags: <defaults>
</compile_context>

<pallas_src>
import jax
import jax.numpy as jnp
from jax.experimental import pallas as pl
from jax.experimental.pallas import tpu as pltpu


def _round_up(x: int, m: int) -> int:
    return ((x + m - 1) // m) * m


# Sublane multiple per element size (f32/i32 -> 8, bf16/f16 -> 16, i8/u8 -> 32).
_SUBLANE_MULT = {4: 8, 2: 16, 1: 32}

# Cap on elements per input block: bounds the int32 iota / mask / select
# temporaries created by the argmax to <= ~8 MiB each.
_MAX_BLOCK_ELEMS = 2 * 1024 * 1024

# Lane width of one class chunk when C is too large for a single block.
_DEFAULT_CLASS_CHUNK = 2048


def _vmem_budgets() -> tuple:
    """Return (per-input-block byte budget, vmem_limit_bytes) per TPU generation."""
    block_budget = 2 * 1024 * 1024            # conservative fallback
    vmem_limit = 32 * 1024 * 1024
    try:
        cap = getattr(pltpu.get_tpu_info(), "vmem_capacity_bytes", None)
        if cap is not None:
            if cap >= 96 * 1024 * 1024:       # v5e / v6e: 128 MiB physical VMEM
                block_budget, vmem_limit = 6 * 1024 * 1024, 96 * 1024 * 1024
            else:                             # v7x: 64 MiB physical per TensorCore
                block_budget, vmem_limit = 4 * 1024 * 1024, 48 * 1024 * 1024
    except Exception:
        pass
    return block_budget, vmem_limit


def _make_single_chunk_kernel(num_classes: int, is_float: bool):
    """All classes fit in one block: compute and store directly (no scratch)."""

    def kernel(x_ref, o_ref):
        x = x_ref[...]                                    # (tr, C), native dtype
        if is_float:
            # torch.argmax treats NaN as the maximum; map NaN -> +inf so the
            # result is in range (and torch-like) for general inputs.
            x = jnp.where(x != x, jnp.asarray(jnp.inf, x.dtype), x)
        lane = jax.lax.broadcasted_iota(jnp.int32, x.shape, 1)
        row_max = jnp.max(x, axis=-1, keepdims=True)
        hit = x == row_max
        o_ref[...] = jnp.min(
            jnp.where(hit, lane, jnp.int32(num_classes)), axis=-1, keepdims=True
        )

    return kernel


def _make_chunked_kernel(num_classes: int, chunk_lanes: int, needs_lane_mask: bool,
                         acc_dtype, acc_init, fill_val, is_float: bool):
    """Streaming argmax over class chunks with (tr,1) running max/idx scratch."""

    def kernel(x_ref, o_ref, max_sc, idx_sc):
        k = pl.program_id(1)

        @pl.when(k == 0)
        def _init():
            max_sc[...] = jnp.full(max_sc.shape, acc_init, dtype=acc_dtype)
            idx_sc[...] = jnp.zeros(idx_sc.shape, dtype=jnp.int32)

        x = x_ref[...]                                    # (tr, chunk_lanes)
        if is_float:
            x = jnp.where(x != x, jnp.asarray(jnp.inf, x.dtype), x)
        lane = jax.lax.broadcasted_iota(jnp.int32, x.shape, 1) + k * chunk_lanes
        if needs_lane_mask:
            # Last chunk extends past C: its out-of-bounds lanes hold garbage.
            x = jnp.where(lane < num_classes, x, jnp.asarray(fill_val, x.dtype))

        chunk_max = jnp.max(x, axis=-1, keepdims=True)    # (tr, 1)
        hit = x == chunk_max
        chunk_idx = jnp.min(
            jnp.where(hit, lane, jnp.int32(num_classes)), axis=-1, keepdims=True
        )

        cm = chunk_max.astype(acc_dtype)
        better = cm > max_sc[...]          # strict '>' keeps first occurrence
        idx_sc[...] = jnp.where(better, chunk_idx, idx_sc[...])
        max_sc[...] = jnp.where(better, cm, max_sc[...])

        @pl.when(k == pl.num_programs(1) - 1)
        def _finalize():
            o_ref[...] = idx_sc[...]

    return kernel


def onehot_to_indices(onehot: jax.Array, *, tile_rows: int | None = None,
                      max_class_chunk: int = _DEFAULT_CLASS_CHUNK) -> jax.Array:
    """Pallas equivalent of OneHotToIndices.forward: argmax over the last axis.

    Accepts (..., C); returns int32 indices of shape (...).
    """
    orig_shape = onehot.shape
    C = int(orig_shape[-1])
    x2d = onehot.reshape(-1, C)                 # metadata-only reshape
    if x2d.dtype == jnp.bool_:
        x2d = x2d.astype(jnp.int8)              # avoid packed-bool vector blocks
    N = int(x2d.shape[0])

    dt = jnp.dtype(x2d.dtype)
    itemsize = dt.itemsize
    sub = _SUBLANE_MULT.get(itemsize, 8)

    is_float = bool(jnp.issubdtype(dt, jnp.floating))
    acc_dtype = jnp.float32 if is_float else jnp.int32
    acc_init = float("-inf") if is_float else int(jnp.iinfo(jnp.int32).min)
    fill_val = float("-inf") if is_float else int(jnp.iinfo(dt).min)

    # ---- Class-axis blocking ------------------------------------------------
    cc_pad = _round_up(C, 128)                  # lane-padded VMEM width
    max_cc = max(128, _round_up(min(int(max_class_chunk), cc_pad), 128))
    if cc_pad <= max_cc:
        cc_blk = C                              # one chunk, full class dim
        n_k = 1
        needs_mask = False
        row_width = cc_pad
    else:
        cc_blk = max_cc                         # multiple of 128
        n_k = pl.cdiv(C, cc_blk)
        needs_mask = (C % cc_blk) != 0
        row_width = cc_blk

    # ---- Row-axis blocking (byte-budgeted, lane-padding aware) --------------
    block_budget, vmem_limit = _vmem_budgets()
    # (tr,1) buffers are lane-padded to 128 lanes in VMEM: 512 B/row each.
    per_row_overhead = 2 * 512 + (2 * 512 if n_k > 1 else 0)
    row_bytes = row_width * itemsize + per_row_overhead

    if tile_rows is None:
        tr = min(block_budget // row_bytes, _MAX_BLOCK_ELEMS // row_width, 32768)
        if N > sub:
            tr = min(tr, (N + 1) // 2)          # >=2 row tiles: lets v7x's 2 TCs split
        tr = min(tr, N)
    else:
        tr = min(int(tile_rows), N)
    tr = _round_up(max(tr, 1), sub)

    n_i = pl.cdiv(N, tr)                        # tail rows handled by OOB masking

    # ---- Kernel selection ----------------------------------------------------
    if n_k == 1:
        kernel = _make_single_chunk_kernel(C, is_float)
        scratch = []
    else:
        kernel = _make_chunked_kernel(C, cc_blk, needs_mask, acc_dtype,
                                      acc_init, fill_val, is_float)
        scratch = [pltpu.VMEM((tr, 1), acc_dtype),
                   pltpu.VMEM((tr, 1), jnp.int32)]

    out = pl.pallas_call(
        kernel,
        out_shape=jax.ShapeDtypeStruct((N, 1), jnp.int32),
        grid_spec=pltpu.PrefetchScalarGridSpec(
            num_scalar_prefetch=0,
            grid=(n_i, n_k),
            in_specs=[pl.BlockSpec((tr, cc_blk), lambda i, k: (i, k))],
            out_specs=pl.BlockSpec((tr, 1), lambda i, k: (i, 0)),
            scratch_shapes=scratch,
        ),
        compiler_params=pltpu.CompilerParams(
            dimension_semantics=("parallel", "arbitrary"),
            vmem_limit_bytes=vmem_limit,
        ),
    )(x2d)

    return out[:, 0].reshape(orig_shape[:-1])


class OneHotToIndices:
    """Stateless module mirroring the PyTorch nn.Module (no parameters)."""

    def __call__(self, onehot: jax.Array):
        return onehot_to_indices(onehot)


if __name__ == "__main__":
    key = jax.random.PRNGKey(0)
    k1, k2, k3, k4 = jax.random.split(key, 4)

    # --- Check 1: strict one-hot input (the module's intended use). ---------
    batch, seq, num_classes = 2, 8, 32
    true_idx = jax.random.randint(k1, (batch, seq), 0, num_classes)
    onehot = jax.nn.one_hot(true_idx, num_classes, dtype=jnp.float32)

    module = OneHotToIndices()
    pred_idx = jax.block_until_ready(module(onehot))
    assert pred_idx.shape == true_idx.shape
    assert pred_idx.dtype == jnp.int32
    assert bool(jnp.all(pred_idx == true_idx))
    # The PyTorch module returns a Python List[int]; host-side conversion:
    assert [int(v) for v in pred_idx.reshape(-1)] == [int(v) for v in true_idx.reshape(-1)]

    # --- Check 2: general values, ragged row count, small explicit row tile. -
    x = jax.random.normal(k2, (5, 7, 33), dtype=jnp.float32)
    got = jax.block_until_ready(onehot_to_indices(x, tile_rows=8))
    ref = jnp.argmax(x, axis=-1).astype(jnp.int32)
    assert got.shape == ref.shape and bool(jnp.all(got == ref))

    # --- Check 3: class-chunked (large-C) path with a partial last chunk. ----
    y = jax.random.normal(k3, (3, 13, 300), dtype=jnp.float32)
    got = jax.block_until_ready(onehot_to_indices(y, tile_rows=16, max_class_chunk=128))
    ref = jnp.argmax(y, axis=-1).astype(jnp.int32)
    assert got.shape == ref.shape and bool(jnp.all(got == ref))

    # --- Check 4: bf16 one-hot (packed-sublane dtype path). ------------------
    idx4 = jax.random.randint(k4, (3, 5), 0, 17)
    oh4 = jax.nn.one_hot(idx4, 17, dtype=jnp.bfloat16)
    got4 = jax.block_until_ready(onehot_to_indices(oh4))
    assert bool(jnp.all(got4 == idx4))

    print("KERNEL_OK")
</pallas_src>

<mosaic_0001>
module attributes {stable_mosaic.version = 11 : i64} {
  func.func @kernel(%arg0: i32, %arg1: i32, %arg2: memref<8x32xf32, #tpu.memory_space<vmem>>, %arg3: memref<8x1xi32, #tpu.memory_space<vmem>>) attributes {dimension_semantics = [#tpu.dimension_semantics<parallel>, #tpu.dimension_semantics<arbitrary>], iteration_bounds = array<i64: 2, 1>, scalar_prefetch = 0 : i64, scratch_operands = 0 : i64, tpu.core_type = #tpu.core_type<tc>, window_params = [{transform_indices = @transform_0, window_bounds = array<i64: 8, 32>}, {transform_indices = @transform_1, window_bounds = array<i64: 8, 1>}]} {
    %c0 = arith.constant 0 : index
    %c0_0 = arith.constant 0 : index
    %0 = vector.load %arg2[%c0, %c0_0] : memref<8x32xf32, #tpu.memory_space<vmem>>, vector<8x32xf32>
    %1 = arith.cmpf one, %0, %0 : vector<8x32xf32>
    %cst = arith.constant 0x7F800000 : f32
    %2 = vector.broadcast %cst : f32 to vector<8x32xf32>
    %3 = arith.select %1, %2, %0 : vector<8x32xi1>, vector<8x32xf32>
    %4 = tpu.iota {dimensions = array<i32: 1>} : vector<8x32xi32>
    %cst_1 = arith.constant dense<0xFF800000> : vector<8xf32>
    %5 = vector.multi_reduction <maximumf>, %3, %cst_1 [1] : vector<8x32xf32> to vector<8xf32>
    %6 = vector.shape_cast %5 : vector<8xf32> to vector<8x1xf32>
    %7 = vector.broadcast %6 : vector<8x1xf32> to vector<8x32xf32>
    %8 = arith.cmpf oeq, %3, %7 : vector<8x32xf32>
    %c32_i32 = arith.constant 32 : i32
    %9 = vector.broadcast %c32_i32 : i32 to vector<8x32xi32>
    %10 = arith.select %8, %4, %9 : vector<8x32xi1>, vector<8x32xi32>
    %cst_2 = arith.constant dense<2147483647> : vector<8xi32>
    %11 = vector.multi_reduction <minsi>, %10, %cst_2 [1] : vector<8x32xi32> to vector<8xi32>
    %12 = vector.shape_cast %11 : vector<8xi32> to vector<8x1xi32>
    %c0_3 = arith.constant 0 : index
    %c0_4 = arith.constant 0 : index
    %13 = vector.load %arg3[%c0_3, %c0_4] : memref<8x1xi32, #tpu.memory_space<vmem>>, vector<8x1xi32>
    tpu.vector_store %arg3[%c0_3, %c0_4], %12 {strides = array<i32>} : memref<8x1xi32, #tpu.memory_space<vmem>>, vector<8x1xi32>,
    return
  }
  func.func @transform_0(%arg0: i32, %arg1: i32) -> (i32, i32) {
    %c0_i32 = arith.constant 0 : i32
    return %arg0, %arg1 : i32, i32
  }
  func.func @transform_1(%arg0: i32, %arg1: i32) -> (i32, i32) {
    %c0_i32 = arith.constant 0 : i32
    %c0_i32_0 = arith.constant 0 : i32
    return %arg0, %c0_i32 : i32, i32
  }
}

</mosaic_0001>

<bundles_post_ra>
// kernel: tpu_custom_call.1
= control target key start
LH: loop header
LB: loop body
LE: loop exit
PB: predicated region body
PF: predicated region fallthrough
CT: control target
= control target key end

     0   :  { %6 = vsyncpa [#allocation3], 0  ;;  %s494_s0 = inlined_call_operand.hbm [shape: f32[16,32], index: 0, kind: input, shape index: {}]   ;;  %s495_s1 = inlined_call_operand.vmem [shape: s32[16,1], index: 1, kind: output, shape index: {}]  }
   0x1   :  { %8 = vsyncpa [#allocation3 + $0x1], 0  ;;  %s406_s6 = smov 0   ;;  %s408_s7 = smov 0  }
   0x2   :  { %s410_s8 = smov 0   ;;  %s412_s9 = smov 0  }
   0x3   :  { %s414_s10 = smov 0   ;;  %s416_s11 = smov 0  }
   0x4 LB: > { %s248_s12 = sadd.s32 4294967295, %s394_s11   ;;  %s26_s13 = sadd.s32 1, %s390_s10  ;;  %s394_s11 = sphi %s416_s11, %s14_s11   ;;  %s390_s10 = sphi %s414_s10, %s502_s10   ;;  %s386_s9 = sphi %s412_s9, %s501_s9   ;;  %s382_s8 = sphi %s410_s8, %s500_s8   ;;  %s378_s7 = sphi %s408_s7, %s499_s7   ;;  %s374_s6 = sphi %s406_s6, %s498_s6  }
   0x5   : > { %p28_p0 = scmp.ge.s32.totalorder %s26_s13, 2  ;;  %s35_s14 = sadd.s32 1, %s382_s8 }
   0x6   : > { %p42_p1 = scmp.ne.s32.totalorder %s382_s8, %s378_s7  ;;  %p43_p2 = scmp.eq.s32.totalorder %s394_s11, 0 }
   0x7   : > { %s504_s13 = smov (%p28_p0, %s26_s13), 0  ;;  %p48_p4 = scmp.ne.s32.totalorder %s378_s7, %s374_s6 }
   0x8   : > { %p442_p3 = por %p43_p2, %p42_p1  ;;  %s30_s16 = ssub.s32 %s390_s10, %s504_s13 }
   0x9   : > { %p49_p5 = scmp.eq.s32.totalorder %s248_s12, 0  ;;  %p33_p6 = scmp.eq.s32.totalorder %s30_s16, 0 }
   0xa   : > { %p265_p8 = scmp.lt.s32.totalorder %s394_s11, 2  ;;  %s98_s19 = sand.u32 1, %s382_s8  }
   0xb   : > { %p449_p7 = por %p49_p5, %p48_p4  ;;  %s253_s20 = sshll.u32 %s390_s10, 3 }
   0xc   : > { %s455_s18 = scalar_select %p33_p6, %s382_s8, %s35_s14  }
   0xd   : > { %s252_s21 = sshll.u32 %s98_s19, 3  ;;  %s107_s24 = scalar_lea.hbm %s494_s0, %s253_s20 }
   0xe   : > { %s109_s25 = sshll.u32 %s107_s24, 4  ;;  %s102_s26 = scalar_lea.vmem [#allocation2], %s252_s21  ;;  %s110_s25 = int_to_ptr.hbm [resolvable:$true] %s109_s25 }
   0xf   : > { %s111_s27 = sshll.u32 %s102_s26, 4  ;;  %p262_p9 = pnand %p265_p8, %p442_p3  ;;  %s112_s27 = int_to_ptr.vmem [resolvable:$true] %s111_s27 }
  0x10   : > { %p254_p10 = scmp.ge.s32.totalorder %s394_s11, 1  ;;  %p116_p11 = scmp.lt.s32.totalorder %s394_s11, 3 }
  0x11   : > { %s99_s28 = scalar_lea.sflag [#allocation3], %s98_s19 }
  0x12   : > { %264 = dma.hbm_to_vmem [thread:$0]  (!%p262_p9), %s110_s25, 128, %s112_s27, %s99_s28  }
  0x13   : > { %p117_p12 = pnand %p254_p10, %p116_p11 }
  0x14   : > { %s122_s29 = sand.u32 (!%p117_p12), 1, %s378_s7  }
  0x15   : > { %120 = sbr.rel (%p117_p12) target bundleno = 393 (0x189), region = 24  ;;  %s255_s30 = sshll.u32 (!%p117_p12), %s122_s29, 3 }
  0x16   : > { %s123_s2 = scalar_lea.sflag (!%p117_p12), [#allocation3], %s122_s29  ;;  %s126_s3 = scalar_lea.vmem (!%p117_p12), [#allocation2], %s255_s30 }
  0x1a   : > { %369 = dma.done.wait (%p449_p7), %s123_s2, 128  }
  0x1b   : > { %371 = vsyncadd (%p449_p7), %s123_s2, 4294967168  ;;  %v149_v0 = vld [vmem:[%s126_s3] sm:$0xff]  ;;  %vm154_vm0 = vcmask 261120   ;;  %v152_v3 = vlaneseq  ;;  %p145_p13 = scmp.lt.s32.totalorder %s386_s9, 1  ;;  %vm175_vm4 = vcmask 7168  }
  0x1c   : > { %vm150_vm1 = vcmp.ne.f32.partialorder %v149_v0, %v149_v0 }
  0x1d   : > { %v151_v1 = vsel %vm150_vm1, inf, %v149_v0  ;;  %v153_v4 = vand.u32 127, %v152_v3  ;;  %s506_s9 = smov (!%p145_p13, %s386_s9), 1 }
  0x1e   : > { %v155_v2 = vsel %vm154_vm0, %v151_v1, -inf  ;;  %s256_s4 = sshll.u32 %s506_s9, 3 }
  0x1f   : > { %156 = vmax.xlane.f32.xlu0 %v155_v2  ;;  %s148_s12 = scalar_lea.vmem %s495_s1, %s256_s4 }
  0x92   : > { %v157_v5 = vpop.xlane.xlu0 %156 }
  0x93   : > { %vm158_vm2 = vcmp.eq.f32.partialorder %v151_v1, %v157_v5 }
  0x94   : > { %v159_v6 = vsel %vm158_vm2, %v153_v4, 32 }
  0x95   : > { %v160_v7 = vsel %vm154_vm0, %v159_v6, 2147483647 }
  0x96   : > { %v162_v8 = vshra.s32 %v160_v7, 16  ;;  %v161_v10 = vand.u32 65535, %v160_v7 }
  0x98   : > { %v164_v9 = vcvt.s32.f32 %v162_v8  ;;  %v163_v12 = vcvt.s32.f32 %v161_v10 }
  0x9a   : > { %165 = vmin.xlane.f32.xlu0 %v164_v9 }
 0x10d   : > { %v166_v11 = vpop.xlane.xlu0 %165 }
 0x10e   : > { %vm167_vm3 = vcmp.eq.f32.partialorder %v164_v9, %v166_v11  ;;  %v172_v14 = vcvt.f32.s32 %v166_v11 }
 0x10f   : > { %v168_v13 = vsel %vm167_vm3, %v163_v12, inf }
 0x110   : > { %169 = vmin.xlane.f32.xlu1 %v168_v13  ;;  %v173_v16 = vshll.u32 %v172_v14, 16 }
 0x183   : > { %v170_v15 = vpop.xlane.xlu1 %169 }
 0x184   : > { %v171_v17 = vcvt.f32.s32 %v170_v15 }
 0x186   : > { %v174_v18 = vadd.s32 %v173_v16, %v171_v17 }
 0x188   : > { %176 = vst.msk [vmem:[%s148_s12] sm:$0xff] %vm175_vm4, %v174_v18 }
 0x189 PF: > { %s14_s11 = sadd.s32 1, %s394_s11   ;;  %s498_s6 = smov %s378_s7 }
 0x18a   : > { %p11_p0 = scmp.ge.s32.totalorder %s14_s11, 4   ;;  %s499_s7 = smov %s382_s8 }
 0x18b   : > { %s500_s8 = smov %s455_s18  ;;  %s501_s9 = smov %s390_s10 }
 0x18c   : > { %s502_s10 = smov %s504_s13  ;;  %13 = sbr.rel (!%p11_p0) target bundleno = 4 (0x4), region = 64 }
 0x191   :  { %196 = vsyncpa [#allocation3], 1 }
 0x192   :  { %198 = vsyncpa [#allocation3 + $0x1], 1 }

</bundles_post_ra>
